<compile_context>
chip_gen: v7x
topology: tpu7x:2x2x1
jax: 0.10.0
libtpu: 0.0.40
codegen_flags: <defaults>
</compile_context>

<pallas_src>
import functools

import jax
import jax.numpy as jnp
from jax.experimental import pallas as pl
from jax.experimental.pallas import tpu as pltpu


def _round_up(x, m):
    return (x + m - 1) // m * m


def _pick_batch_tile(B, hw, kp, fp):
    """Largest batch tile that keeps >=2 grid steps (v7x megacore) and a small
    per-step VMEM footprint (2x double-buffered bf16 LHS + f32 activation)."""
    budget = 8 * 1024 * 1024
    for tb in range(max(1, B // 2), 0, -1):
        if B % tb != 0:
            continue
        vmem = tb * hw * (2 * kp * 2 + fp * 4)
        if vmem <= budget:
            return tb
    return 1


# ----------------------------------------------------------------------------
# Fused kernel: one K=9C conv matmul + bias + ReLU + pooled-sum + Linear head.
# One grid step == TB images.
# ----------------------------------------------------------------------------
def _fused_comb_kernel(xcol_ref, wc_ref, bc_ref, fcw_ref, fcb_ref, o_ref, *, TB, HW):
    # xcol_ref: [TB*HW, Kp]   bf16  tap-major im2col rows (K padded to 128)
    # wc_ref  : [Kp, Fp]      bf16  tap-major conv weight, zero-padded
    # bc_ref  : [1, Fp]       f32   conv bias (padded)
    # fcw_ref : [Fp, CLSp]    f32   fc weight^T with 1/(H*W) folded in (padded)
    # fcb_ref : [1, CLSp]     f32   fc bias (padded)
    # o_ref   : [TB, 1, CLSp] f32   logits for this batch tile
    acc = jnp.dot(xcol_ref[...], wc_ref[...],
                  preferred_element_type=jnp.float32)          # [TB*HW, Fp] f32
    feat = jnp.maximum(acc + bc_ref[...], 0.0)                 # bias + ReLU (f32)

    # Per-image pooled sums (static TB, so a tiny unrolled loop of sublane
    # reductions; the mean's 1/(H*W) is folded into fcw on the wrapper side).
    rows = []
    for t in range(TB):
        rows.append(jnp.sum(feat[t * HW:(t + 1) * HW, :], axis=0, keepdims=True))
    pooled = jnp.concatenate(rows, axis=0)                     # [TB, Fp] f32

    # Linear head: [TB, Fp] @ [Fp, CLSp] + bias -> lane-dense store.
    logits = (jnp.dot(pooled, fcw_ref[...],
                      preferred_element_type=jnp.float32) + fcb_ref[...])
    o_ref[...] = logits[:, None, :]                            # [TB, 1, CLSp]


def comb_forward(x, conv_w, conv_b, fc_w, fc_b):
    """x: [B, C, H, W] NCHW.  conv_w: [F, C, 3, 3], conv_b: [F],
    fc_w: [class_num, F] (PyTorch Linear layout), fc_b: [class_num]."""
    B, C, H, W = x.shape
    F = conv_w.shape[0]
    CLS = fc_w.shape[0]
    HW = H * W
    K = 9 * C
    Kp = _round_up(K, 128)
    Fp = _round_up(F, 128)
    CLSp = _round_up(CLS, 128)

    # ---- wrapper-side layout prep (cheap XLA ops, done once per call) ----
    # Tap-major im2col rows: x_col[b*HW + h*W + w, t*C + c] = x_pad[b, h+dh, w+dw, c]
    x_nhwc = jnp.transpose(x, (0, 2, 3, 1))                     # [B,H,W,C]
    x_pad = jnp.pad(x_nhwc, ((0, 0), (1, 1), (1, 1), (0, 0)))
    taps = [x_pad[:, dh:dh + H, dw:dw + W, :] for dh in range(3) for dw in range(3)]
    x_col = jnp.concatenate(taps, axis=-1).reshape(B * HW, K)   # [B*HW, 9C]
    x_col = jnp.pad(x_col, ((0, 0), (0, Kp - K))).astype(jnp.bfloat16)

    # Tap-major conv weight [9C, F] -> zero-padded [Kp, Fp] bf16.
    wc = jnp.transpose(conv_w, (2, 3, 1, 0)).reshape(K, F)
    wc = jnp.pad(wc, ((0, Kp - K), (0, Fp - F))).astype(jnp.bfloat16)
    bc = jnp.pad(conv_b, (0, Fp - F)).reshape(1, Fp).astype(jnp.float32)

    # fc weight^T with the pooling mean folded in, zero-padded to [Fp, CLSp].
    fcw = (fc_w.T * (1.0 / HW)).astype(jnp.float32)
    fcw = jnp.pad(fcw, ((0, Fp - F), (0, CLSp - CLS)))
    fcb = jnp.pad(fc_b, (0, CLSp - CLS)).reshape(1, CLSp).astype(jnp.float32)

    TB = _pick_batch_tile(B, HW, Kp, Fp)
    grid = (B // TB,)
    kernel = functools.partial(_fused_comb_kernel, TB=TB, HW=HW)

    out = pl.pallas_call(
        kernel,
        out_shape=jax.ShapeDtypeStruct((B, 1, CLSp), jnp.float32),
        grid=grid,
        in_specs=[
            pl.BlockSpec((TB * HW, Kp), lambda b: (b, 0)),
            pl.BlockSpec((Kp, Fp), lambda b: (0, 0)),
            pl.BlockSpec((1, Fp), lambda b: (0, 0)),
            pl.BlockSpec((Fp, CLSp), lambda b: (0, 0)),
            pl.BlockSpec((1, CLSp), lambda b: (0, 0)),
        ],
        out_specs=pl.BlockSpec((TB, 1, CLSp), lambda b: (b, 0, 0)),
        compiler_params=pltpu.CompilerParams(
            dimension_semantics=("parallel",),
            vmem_limit_bytes=32 * 1024 * 1024,
        ),
    )(x_col, wc, bc, fcw, fcb)

    return out.reshape(B, CLSp)[:, :CLS]


def _reference(x, conv_w, conv_b, fc_w, fc_b):
    """Plain-JAX (f32) reference of the same synthetic backbone + fc head."""
    y = jax.lax.conv_general_dilated(
        x, conv_w, window_strides=(1, 1), padding="SAME",
        dimension_numbers=("NCHW", "OIHW", "NCHW"))
    y = jnp.maximum(y + conv_b[None, :, None, None], 0.0)
    ft = jnp.mean(y, axis=(2, 3))                               # global avg pool
    return ft @ fc_w.T + fc_b


if __name__ == "__main__":
    # Small deterministic shapes consistent with the module.
    B, C, H, W = 2, 4, 16, 16          # input x: NCHW
    IN_SIZE = 32                       # backbone feature width (= fc in_size)
    CLASS_NUM = 10

    key = jax.random.PRNGKey(0)
    kx, kcw, kcb, kfw, kfb = jax.random.split(key, 5)

    x = jax.random.normal(kx, (B, C, H, W), dtype=jnp.float32)
    conv_w = 0.1 * jax.random.normal(kcw, (IN_SIZE, C, 3, 3), dtype=jnp.float32)
    conv_b = 0.1 * jax.random.normal(kcb, (IN_SIZE,), dtype=jnp.float32)
    fc_w = 0.1 * jax.random.normal(kfw, (CLASS_NUM, IN_SIZE), dtype=jnp.float32)
    fc_b = 0.1 * jax.random.normal(kfb, (CLASS_NUM,), dtype=jnp.float32)

    out = comb_forward(x, conv_w, conv_b, fc_w, fc_b)
    jax.block_until_ready(out)

    ref = _reference(x, conv_w, conv_b, fc_w, fc_b)
    assert out.shape == (B, CLASS_NUM)
    # bf16 conv operands with f32 accumulation -> slightly looser tolerance.
    assert jnp.allclose(out, ref, atol=1e-2, rtol=1e-2)

    print("KERNEL_OK")
</pallas_src>

<mosaic_0001>
module attributes {stable_mosaic.version = 11 : i64} {
  func.func @_fused_comb_kernel(%arg0: i32, %arg1: memref<256x128xbf16, #tpu.memory_space<vmem>>, %arg2: memref<128x128xbf16, #tpu.memory_space<vmem>>, %arg3: memref<1x128xf32, #tpu.memory_space<vmem>>, %arg4: memref<128x128xf32, #tpu.memory_space<vmem>>, %arg5: memref<1x128xf32, #tpu.memory_space<vmem>>, %arg6: memref<1x1x128xf32, #tpu.memory_space<vmem>>) attributes {dimension_semantics = [#tpu.dimension_semantics<parallel>], iteration_bounds = array<i64: 2>, scalar_prefetch = 0 : i64, scratch_operands = 0 : i64, tpu.core_type = #tpu.core_type<tc>, window_params = [{transform_indices = @transform_0, window_bounds = array<i64: 256, 128>}, {pipeline_mode = #tpu.pipeline_mode<synchronous>, transform_indices = @transform_1, window_bounds = array<i64: 128, 128>}, {pipeline_mode = #tpu.pipeline_mode<synchronous>, transform_indices = @transform_2, window_bounds = array<i64: 1, 128>}, {pipeline_mode = #tpu.pipeline_mode<synchronous>, transform_indices = @transform_3, window_bounds = array<i64: 128, 128>}, {pipeline_mode = #tpu.pipeline_mode<synchronous>, transform_indices = @transform_4, window_bounds = array<i64: 1, 128>}, {transform_indices = @transform_5, window_bounds = array<i64: 1, 1, 128>}]} {
    %c0 = arith.constant 0 : index
    %c0_0 = arith.constant 0 : index
    %0 = vector.load %arg1[%c0, %c0_0] : memref<256x128xbf16, #tpu.memory_space<vmem>>, vector<256x128xbf16>
    %c0_1 = arith.constant 0 : index
    %c0_2 = arith.constant 0 : index
    %1 = vector.load %arg2[%c0_1, %c0_2] : memref<128x128xbf16, #tpu.memory_space<vmem>>, vector<128x128xbf16>
    %cst = arith.constant dense<0.000000e+00> : vector<256x128xf32>
    %2 = tpu.matmul %0, %1, %cst {dimension_numbers = #tpu.dot_dimension_numbers<[1], [0], [0], [1], [0, 0, 1, 1], [], []>} : vector<256x128xbf16>, vector<128x128xbf16>, vector<256x128xf32> -> vector<256x128xf32>
    %c0_3 = arith.constant 0 : index
    %c0_4 = arith.constant 0 : index
    %3 = vector.load %arg3[%c0_3, %c0_4] : memref<1x128xf32, #tpu.memory_space<vmem>>, vector<1x128xf32>
    %4 = vector.broadcast %3 : vector<1x128xf32> to vector<256x128xf32>
    %5 = arith.addf %2, %4 : vector<256x128xf32>
    %cst_5 = arith.constant 0.000000e+00 : f32
    %6 = vector.broadcast %cst_5 : f32 to vector<256x128xf32>
    %7 = arith.maximumf %5, %6 : vector<256x128xf32>
    %cst_6 = arith.constant dense<0.000000e+00> : vector<128xf32>
    %8 = vector.multi_reduction <add>, %7, %cst_6 [0] : vector<256x128xf32> to vector<128xf32>
    %9 = vector.shape_cast %8 : vector<128xf32> to vector<1x128xf32>
    %c0_7 = arith.constant 0 : index
    %c0_8 = arith.constant 0 : index
    %10 = vector.load %arg4[%c0_7, %c0_8] : memref<128x128xf32, #tpu.memory_space<vmem>>, vector<128x128xf32>
    %cst_9 = arith.constant dense<0.000000e+00> : vector<1x128xf32>
    %11 = tpu.matmul %9, %10, %cst_9 {dimension_numbers = #tpu.dot_dimension_numbers<[1], [0], [0], [1], [0, 0, 1, 1], [], []>} : vector<1x128xf32>, vector<128x128xf32>, vector<1x128xf32> -> vector<1x128xf32>
    %c0_10 = arith.constant 0 : index
    %c0_11 = arith.constant 0 : index
    %12 = vector.load %arg5[%c0_10, %c0_11] : memref<1x128xf32, #tpu.memory_space<vmem>>, vector<1x128xf32>
    %13 = arith.addf %11, %12 : vector<1x128xf32>
    %14 = vector.shape_cast %13 : vector<1x128xf32> to vector<1x1x128xf32>
    %c0_12 = arith.constant 0 : index
    %c0_13 = arith.constant 0 : index
    %c0_14 = arith.constant 0 : index
    %15 = vector.load %arg6[%c0_12, %c0_13, %c0_14] : memref<1x1x128xf32, #tpu.memory_space<vmem>>, vector<1x1x128xf32>
    tpu.vector_store %arg6[%c0_12, %c0_13, %c0_14], %14 {strides = array<i32>} : memref<1x1x128xf32, #tpu.memory_space<vmem>>, vector<1x1x128xf32>,
    return
  }
  func.func @transform_0(%arg0: i32) -> (i32, i32) {
    %c0_i32 = arith.constant 0 : i32
    %c0_i32_0 = arith.constant 0 : i32
    return %arg0, %c0_i32 : i32, i32
  }
  func.func @transform_1(%arg0: i32) -> (i32, i32) {
    %c0_i32 = arith.constant 0 : i32
    %c0_i32_0 = arith.constant 0 : i32
    %c0_i32_1 = arith.constant 0 : i32
    return %c0_i32, %c0_i32_0 : i32, i32
  }
  func.func @transform_2(%arg0: i32) -> (i32, i32) {
    %c0_i32 = arith.constant 0 : i32
    %c0_i32_0 = arith.constant 0 : i32
    %c0_i32_1 = arith.constant 0 : i32
    return %c0_i32, %c0_i32_0 : i32, i32
  }
  func.func @transform_3(%arg0: i32) -> (i32, i32) {
    %c0_i32 = arith.constant 0 : i32
    %c0_i32_0 = arith.constant 0 : i32
    %c0_i32_1 = arith.constant 0 : i32
    return %c0_i32, %c0_i32_0 : i32, i32
  }
  func.func @transform_4(%arg0: i32) -> (i32, i32) {
    %c0_i32 = arith.constant 0 : i32
    %c0_i32_0 = arith.constant 0 : i32
    %c0_i32_1 = arith.constant 0 : i32
    return %c0_i32, %c0_i32_0 : i32, i32
  }
  func.func @transform_5(%arg0: i32) -> (i32, i32, i32) {
    %c0_i32 = arith.constant 0 : i32
    %c0_i32_0 = arith.constant 0 : i32
    %c0_i32_1 = arith.constant 0 : i32
    return %arg0, %c0_i32, %c0_i32_0 : i32, i32, i32
  }
}

</mosaic_0001>

<bundles_post_ra>
// kernel: tpu_custom_call.1
= control target key start
LH: loop header
LB: loop body
LE: loop exit
PB: predicated region body
PF: predicated region fallthrough
CT: control target
= control target key end

     0   :  { %10 = vsyncpa [#allocation3], 0  ;;  %s1717_s0 = inlined_call_operand.hbm [shape: bf16[512,128], index: 0, kind: input, shape index: {}]   ;;  %s1718_s1 = inlined_call_operand.hbm [shape: bf16[128,128], index: 1, kind: input, shape index: {}]   ;;  %s1719_s2 = inlined_call_operand.vmem [shape: f32[1,128], index: 2, kind: input, shape index: {}]   ;;  %s1720_s3 = inlined_call_operand.hbm [shape: f32[128,128], index: 3, kind: input, shape index: {}]   ;;  %s1721_s4 = inlined_call_operand.vmem [shape: f32[1,128], index: 4, kind: input, shape index: {}]   ;;  %s1722_s5 = inlined_call_operand.hbm [shape: f32[2,1,128], index: 5, kind: output, shape index: {}]  }
   0x1   :  { %12 = vsyncpa [#allocation3 + $0x1], 0 }
   0x2   :  { %13 = vsyncpa [#allocation6], 0 }
   0x3   :  { %14 = vsyncpa [#allocation4], 0 }
   0x4   :  { %16 = vsyncpa [#allocation4 + $0x1], 0  ;;  %s1390_s18 = smov 0   ;;  %s1392_s19 = smov 0  }
   0x5   :  { %s1394_s20 = smov 0   ;;  %s1396_s21 = smov 0  }
   0x6 LB: > { %s1411_s22 = sadd.s32 4294967295, %s1347_s21   ;;  %s888_s23 = sadd.s32 4294967294, %s1347_s21   ;;  %s1347_s21 = sphi %s1396_s21, %s1742_s21   ;;  %s1343_s20 = sphi %s1394_s20, %s1741_s20   ;;  %s1339_s19 = sphi %s1392_s19, %s1740_s19   ;;  %s1335_s18 = sphi %s1390_s18, %s1739_s18  }
   0x7   : > { %p42_p0 = scmp.ne.s32.totalorder %s1339_s19, %s1335_s18  ;;  %p1723_p1 = scmp.eq.s32.totalorder %s1411_s22, 0 }
   0x8   : > { %p156_p3 = scmp.eq.s32.totalorder %s888_s23, 1  ;;  %p889_p5 = scmp.ge.s32.totalorder %s1347_s21, 1 }
   0x9   : > { %p1420_p4 = por %p1723_p1, %p42_p0  ;;  %p163_p7 = scmp.lt.s32.totalorder %s1347_s21, 3 }
   0xa   : > { %p1425_p6 = por %p156_p3, %p42_p0  ;;  %s1349_s27 = smov [#allocation5]  }
   0xb   : > { %s1726_s24 = scalar_select %p1420_p4, 1, 0 }
   0xc   : > { %s1727_s25 = scalar_select %p1425_p6, 1, 0 }
   0xd   : > { %p1430_p8 = pnand %p889_p5, %p163_p7  ;;  %s175_s28 = sshll.u32 %s1349_s27, 4  ;;  %s1434_s28 = int_to_ptr.vmem [resolvable:$true] %s175_s28 }
   0xe   : > { %s1350_s30 = smov [#allocation7]   ;;  %s1191_s9 = scalar_lea.hbm %s1718_s1, 1024 }
   0xf   : > { %p1105_p9 = pneg %p1430_p8  ;;  %s191_s6 = sshll.u32 %s1350_s30, 4  ;;  %s1445_s6 = int_to_ptr.vmem [resolvable:$true] %s191_s6 }
  0x10   : > { %p1192_p12 = scmp.ne.s32.totalorder %s1718_s1, %s1191_s9  ;;  %p1198_p5 = scmp.lt.u32.totalorder %s1191_s9, %s1718_s1 }
  0x11   : > { %p1441_p11 = pnand %p1105_p9, %p1723_p1 }
  0x13   : > { %p1193_p13 = pneg %p1441_p11 }
  0x15   : > { %p1194_p0 = pnand %p1193_p13, %p1192_p12 }
  0x17   : > { %p1195_p3 = pneg %p1194_p0 }
  0x19   : > { %p1200_p7 = pnand %p1198_p5, %p1195_p3 }
  0x1b   : > { %1203 = shalt.err (!%p1200_p7)
}
  0x1c   : > { %s1204_s14 = scalar_lea.vmem %s1434_s28, 1024  ;;  %p1212_p2 = scmp.lt.s32.totalorder %s1434_s28, %s1434_s28 }
  0x1d   : > { %p1205_p9 = scmp.ne.s32.totalorder %s1434_s28, %s1204_s14  ;;  %p1213_p12 = scmp.lt.s32.totalorder %s1204_s14, %s1204_s14 }
  0x1f   : > { %p1207_p10 = pnand %p1205_p9, %p1193_p13  ;;  %p1214_p0 = por %p1213_p12, %p1212_p2 }
  0x21   : > { %p1208_p1 = pneg %p1207_p10 }
  0x23   : > { %p1215_p6 = pnand %p1214_p0, %p1208_p1 }
  0x25   : > { %1218 = shalt.err (!%p1215_p6)
}
  0x26   : > { %s1351_s15 = smov 64   ;;  %s1352_s16 = smov 4  }
  0x27   : > { %1108 = dma.hbm_to_vmem [thread:$0]  (!%p1441_p11), %s1718_s1, 1024, %s1434_s28, [#allocation6], %s1351_s15, %s1351_s15, %s1352_s16  }
  0x28   : > { %s1219_s7 = scalar_lea.hbm %s1720_s3, 2048 }
  0x29   : > { %p1220_p1 = scmp.ne.s32.totalorder %s1720_s3, %s1219_s7  ;;  %p1226_p10 = scmp.lt.u32.totalorder %s1219_s7, %s1720_s3 }
  0x2b   : > { %p1222_p2 = pnand %p1220_p1, %p1193_p13 }
  0x2d   : > { %p1223_p6 = pneg %p1222_p2 }
  0x2f   : > { %p1228_p3 = pnand %p1226_p10, %p1223_p6 }
  0x31   : > { %1231 = shalt.err (!%p1228_p3)
}
  0x32   : > { %s1232_s28 = scalar_lea.vmem %s1445_s6, 2048  ;;  %p1240_p12 = scmp.lt.s32.totalorder %s1445_s6, %s1445_s6 }
  0x33   : > { %p1233_p5 = scmp.ne.s32.totalorder %s1445_s6, %s1232_s28  ;;  %p1241_p0 = scmp.lt.s32.totalorder %s1232_s28, %s1232_s28 }
  0x35   : > { %p1235_p7 = pnand %p1233_p5, %p1193_p13  ;;  %p1242_p1 = por %p1241_p0, %p1240_p12 }
  0x37   : > { %p1236_p9 = pneg %p1235_p7 }
  0x39   : > { %p1243_p2 = pnand %p1242_p1, %p1236_p9 }
  0x3b   : > { %1246 = shalt.err (!%p1243_p2)
}
  0x3c   : > { %s1353_s12 = smov 128   ;;  %s1354_s13 = smov 8  }
  0x3d   : > { %1111 = dma.hbm_to_vmem [thread:$0]  (!%p1441_p11), %s1720_s3, 2048, %s1445_s6, [#allocation6], %s1353_s12, %s1353_s12, %s1354_s13  }
  0x3e   : > { %s1503_s23 = sadd.s32 1, %s1347_s21   ;;  %s29_s30 = sadd.s32 1, %s1343_s20 }
  0x3f   : > { %s26_s27 = ssub.s32 %s1347_s21, %s1503_s23  ;;  %p36_p6 = scmp.ne.s32.totalorder %s1343_s20, %s1339_s19 }
  0x40   : > { %p27_p13 = scmp.eq.s32.totalorder %s26_s27, 0  ;;  %p37_p10 = scmp.eq.s32.totalorder %s1347_s21, 0 }
  0x41   : > { %p1730_p5 = scmp.eq.s32.totalorder %s1411_s22, 1  ;;  %p1122_p9 = scmp.lt.s32.totalorder %s1347_s21, 2 }
  0x42   : > { %s1512_s7 = scalar_select %p27_p13, %s1343_s20, %s29_s30  }
  0x43   : > { %p38_p3 = por %p37_p10, %p36_p6  ;;  %p1516_p7 = por %p1730_p5, %p36_p6 }
  0x44   : > { %s208_s29 = sand.u32 1, %s1343_s20   ;;  %s928_s6 = sshll.u32 %s1347_s21, 11 }
  0x45   : > { %s1731_s8 = scalar_select %p1516_p7, 1, 0 }
  0x46   : > { %s893_s9 = sshll.u32 %s208_s29, 7  ;;  %s1526_s28 = scalar_lea.hbm %s1717_s0, %s928_s6 }
  0x47   : > { %s212_s12 = scalar_lea.vmem [#allocation2], %s893_s9  ;;  %p1530_p11 = pnand %p1122_p9, %p38_p3 }
  0x48   : > { %s219_s13 = sshll.u32 %s212_s12, 4  ;;  %s1534_s17 = scalar_lea.sflag [#allocation3], %s208_s29  ;;  %s1528_s13 = int_to_ptr.vmem [resolvable:$true] %s219_s13 }
  0x49   : > { %s1247_s27 = scalar_lea.hbm %s1526_s28, 2048  ;;  %p1249_p0 = pneg %p1530_p11 }
  0x4a   : > { %p1248_p12 = scmp.ne.s32.totalorder %s1526_s28, %s1247_s27  ;;  %s1252_s6 = scalar_lea.hbm %s1717_s0, 4096 }
  0x4b   : > { %p1253_p13 = scmp.lt.u32.totalorder %s1526_s28, %s1717_s0  ;;  %p1254_p6 = scmp.lt.u32.totalorder %s1252_s6, %s1247_s27 }
  0x4c   : > { %p1250_p1 = pnand %p1249_p0, %p1248_p12  ;;  %p1256_p3 = scmp.lt.u32.totalorder %s1247_s27, %s1526_s28 }
  0x4d   : > { %p1255_p10 = por %p1254_p6, %p1253_p13 }
  0x4e   : > { %p1251_p2 = pneg %p1250_p1 }
  0x4f   : > { %p1257_p5 = por %p1256_p3, %p1255_p10 }
  0x51   : > { %p1258_p9 = pnand %p1257_p5, %p1251_p2 }
  0x53   : > { %1261 = shalt.err (!%p1258_p9)
}
  0x54   : > { %s1262_s29 = scalar_lea.vmem %s1528_s13, 2048  ;;  %s1355_s12 = smov [#allocation2]  }
  0x55   : > { %p1263_p12 = scmp.ne.s32.totalorder %s1528_s13, %s1262_s29  ;;  %s1267_s30 = sshll.u32 %s1355_s12, 4  ;;  %s1268_s30 = int_to_ptr.vmem [resolvable:$false] %s1267_s30 }
  0x56   : > { %s1269_s9 = scalar_lea.vmem %s1268_s30, 4096  ;;  %p1270_p4 = scmp.lt.s32.totalorder %s1528_s13, %s1268_s30 }
  0x57   : > { %p1265_p1 = pnand %p1263_p12, %p1249_p0  ;;  %p1271_p13 = scmp.lt.s32.totalorder %s1269_s9, %s1262_s29 }
  0x59   : > { %p1266_p7 = pneg %p1265_p1  ;;  %p1272_p6 = por %p1271_p13, %p1270_p4 }
  0x5b   : > { %p1273_p10 = pnand %p1272_p6, %p1266_p7 }
  0x5d   : > { %1276 = shalt.err (!%p1273_p10)
}
  0x5e   : > { %1115 = dma.hbm_to_vmem [thread:$0]  (!%p1530_p11), %s1526_s28, 2048, %s1528_s13, %s1534_s17, %s1351_s15, %s1351_s15, %s1352_s16  }
  0x5f   : > { %231 = sbr.rel (%p1430_p8) target bundleno = 660 (0x294), region = 40  ;;  %s1568_s27 = sand.u32 (!%p1430_p8), 1, %s1339_s19  }
  0x60   : > { %s897_s6 = sshll.u32 (!%p1430_p8), %s1568_s27, 7  ;;  %s234_s10 = scalar_lea.sflag (!%p1430_p8), [#allocation3], %s1568_s27 }
  0x61   : > { %s1572_s11 = scalar_lea.vmem (!%p1430_p8), [#allocation2], %s897_s6  ;;  %p1733_p4 = scmp.ne.s32.totalorder (!%p1430_p8), %s1726_s24, 0 }
  0x66   : > { %1322 = dma.done.wait (%p1733_p4), %s234_s10, 2048  }
  0x67   : > { %1324 = vsyncadd (%p1733_p4), %s234_s10, 4294965248  ;;  %p1734_p7 = scmp.eq.s32.totalorder %s1411_s22, 0 }
  0x69   : > { %1326 = dma.done.wait (%p1734_p7), [#allocation6], 3072   ;;  %p1735_p8 = pmov %p1734_p7 }
  0x6a   : > { %v1167_v0 = vld [vmem:[#allocation5] sm:$0xff]   ;;  %v1168_v1 = vld [vmem:[#allocation5 + $0x8] sm:$0xff]   ;;  %v1169_v2 = vld [vmem:[#allocation5 + $0x10] sm:$0xff]   ;;  %v1356_v27 = vmov 0.0|0.0   ;;  %vm1357_vm0 = vmmov 0   ;;  %v1358_v49 = vmov 0.0  }
  0x6b   : > { %1328 = vsyncadd (%p1735_p8), [#allocation6], 4294964224  ;;  %970 = vmatprep.subr.bf16.mxu0 %v1167_v0  ;;  %1077 = vmatprep.subr.bf16.mxu1 %v1167_v0  ;;  %v1170_v3 = vld [vmem:[#allocation5 + $0x18] sm:$0xff]   ;;  %v1175_v4 = vld [vmem:[%s1572_s11] sm:$0xff]   ;;  %s925_s28 = sshll.u32 %s1411_s22, 4  ;;  %s270_s13 = scalar_lea.vmem [#allocation8], %s1568_s27 }
  0x6c   : > { %971 = vmatpush3.bf16.msra.mxu0 %v1167_v0  ;;  %1085 = vmatpush3.bf16.msra.mxu1 %v1167_v0  ;;  %v1171_v5 = vld [vmem:[#allocation5 + $0x20] sm:$0xff]   ;;  %v1172_v6 = vld [vmem:[#allocation5 + $0x28] sm:$0xff]   ;;  %v1173_v8 = vld [vmem:[#allocation5 + $0x30] sm:$0xff]   ;;  %s803_s14 = sshll.u32 %s270_s13, 4  ;;  %s1673_s12 = scalar_lea.hbm %s1722_s5, %s925_s28  ;;  %s1675_s14 = int_to_ptr.vmem [resolvable:$true] %s803_s14 }
  0x6d   : > { %972 = vmatprep.subr.bf16.mxu0 %v1168_v1  ;;  %1078 = vmatprep.subr.bf16.mxu1 %v1168_v1  ;;  %v1183_v7 = vld [vmem:[%s1572_s11 + $0x40] sm:$0xff]   ;;  %v1174_v9 = vld [vmem:[#allocation5 + $0x38] sm:$0xff]   ;;  %v1176_v10 = vld [vmem:[%s1572_s11 + $0x8] sm:$0xff]   ;;  %s791_s30 = scalar_lea.sflag [#allocation4], %s1568_s27  ;;  %s1277_s9 = scalar_lea.vmem %s1675_s14, 16 }
  0x6e   : > { %986 = vmatprep.mubr.bf16.mxu0 %v1175_v4  ;;  %1002 = vmatprep.mubr.bf16.mxu1 %v1183_v7  ;;  %v1184_v11 = vld [vmem:[%s1572_s11 + $0x48] sm:$0xff]   ;;  %v1177_v12 = vld [vmem:[%s1572_s11 + $0x10] sm:$0xff]   ;;  %v1178_v14 = vld [vmem:[%s1572_s11 + $0x18] sm:$0xff]   ;;  %p1278_p11 = scmp.ne.s32.totalorder %s1675_s14, %s1277_s9  ;;  %p1736_p0 = scmp.ne.s32.totalorder %s1731_s8, 0 }
  0x6f   : > { %v1185_v13 = vld [vmem:[%s1572_s11 + $0x50] sm:$0xff]   ;;  %v1186_v15 = vld [vmem:[%s1572_s11 + $0x58] sm:$0xff]   ;;  %v1179_v16 = vld [vmem:[%s1572_s11 + $0x20] sm:$0xff]   ;;  %s1359_s22 = smov [#allocation8]  }
  0x70   : > { %973 = vmatpush3.bf16.msra.mxu0 %v1168_v1  ;;  %1086 = vmatpush3.bf16.msra.mxu1 %v1168_v1  ;;  %v1187_v17 = vld [vmem:[%s1572_s11 + $0x60] sm:$0xff]   ;;  %v1180_v18 = vld [vmem:[%s1572_s11 + $0x28] sm:$0xff]   ;;  %v1181_v20 = vld [vmem:[%s1572_s11 + $0x30] sm:$0xff]   ;;  %p1279_p2 = pnand %p1278_p11, %p1736_p0  ;;  %s1281_s6 = sshll.u32 %s1359_s22, 4  ;;  %s1282_s6 = int_to_ptr.vmem [resolvable:$false] %s1281_s6 }
  0x71   : > { %974 = vmatprep.subr.bf16.mxu0 %v1169_v2  ;;  %1079 = vmatprep.subr.bf16.mxu1 %v1169_v2  ;;  %v1188_v19 = vld [vmem:[%s1572_s11 + $0x68] sm:$0xff]   ;;  %v1189_v21 = vld [vmem:[%s1572_s11 + $0x70] sm:$0xff]   ;;  %v1182_v22 = vld [vmem:[%s1572_s11 + $0x38] sm:$0xff]   ;;  %s1283_s10 = scalar_lea.vmem %s1282_s6, 32  ;;  %p1284_p5 = scmp.lt.s32.totalorder %s1675_s14, %s1282_s6 }
  0x72   : > { %v1190_v23 = vld [vmem:[%s1572_s11 + $0x78] sm:$0xff]   ;;  %v702_v24 = vld [vmem:[#allocation7] sm:$0xff]  ;;  %v703_v25 = vld [vmem:[#allocation7 + $0x8] sm:$0xff]  ;;  %p1280_p3 = pneg %p1279_p2  ;;  %p1285_p9 = scmp.lt.s32.totalorder %s1283_s10, %s1277_s9 }
  0x73   : > { %v1054_v26 = vpack.c.bf16 %v703_v25, %v702_v24  ;;  %v704_v28 = vld [vmem:[#allocation7 + $0x10] sm:$0xff]  ;;  %v705_v29 = vld [vmem:[#allocation7 + $0x18] sm:$0xff]  ;;  %v706_v31 = vld [vmem:[#allocation7 + $0x20] sm:$0xff] }
  0x74   : > { %975 = vmatpush3.bf16.msra.mxu0 %v1169_v2  ;;  %1087 = vmatpush3.bf16.msra.mxu1 %v1169_v2  ;;  %v1057_v30 = vpack.c.bf16 %v705_v29, %v704_v28  ;;  %v707_v32 = vld [vmem:[#allocation7 + $0x28] sm:$0xff]  ;;  %v708_v34 = vld [vmem:[#allocation7 + $0x30] sm:$0xff]  ;;  %v709_v35 = vld [vmem:[#allocation7 + $0x38] sm:$0xff]  ;;  %p1286_p12 = por %p1285_p9, %p1284_p5 }
  0x75   : > { %976 = vmatprep.subr.bf16.mxu0 %v1170_v3  ;;  %1080 = vmatprep.subr.bf16.mxu1 %v1170_v3  ;;  %v1060_v33 = vpack.c.bf16 %v707_v32, %v706_v31  ;;  %v1063_v36 = vpack.c.bf16 %v709_v35, %v708_v34  ;;  %v710_v37 = vld [vmem:[#allocation7 + $0x40] sm:$0xff]  ;;  %v711_v38 = vld [vmem:[#allocation7 + $0x48] sm:$0xff]  ;;  %v712_v40 = vld [vmem:[#allocation7 + $0x50] sm:$0xff] }
  0x76   : > { %v1066_v39 = vpack.c.bf16 %v711_v38, %v710_v37  ;;  %v713_v41 = vld [vmem:[#allocation7 + $0x58] sm:$0xff]  ;;  %v714_v43 = vld [vmem:[#allocation7 + $0x60] sm:$0xff]  ;;  %v715_v44 = vld [vmem:[#allocation7 + $0x68] sm:$0xff]  ;;  %p1287_p1 = pnand %p1286_p12, %p1280_p3 }
  0x77   : > { %v1069_v42 = vpack.c.bf16 %v713_v41, %v712_v40  ;;  %v1072_v45 = vpack.c.bf16 %v715_v44, %v714_v43  ;;  %v716_v46 = vld [vmem:[#allocation7 + $0x70] sm:$0xff]  ;;  %v717_v47 = vld [vmem:[#allocation7 + $0x78] sm:$0xff]  ;;  %v1601_v50 = vld [vmem:[%s1719_s2] ss:$0 sm:$0xff] }
  0x78   : > { %977 = vmatpush3.bf16.msra.mxu0 %v1170_v3  ;;  %1088 = vmatpush3.bf16.msra.mxu1 %v1170_v3  ;;  %v1075_v48 = vpack.c.bf16 %v717_v47, %v716_v46 }
  0x79   : > { %978 = vmatprep.subr.bf16.mxu0 %v1171_v5  ;;  %1081 = vmatprep.subr.bf16.mxu1 %v1171_v5 }
  0x7c   : > { %979 = vmatpush3.bf16.msra.mxu0 %v1171_v5  ;;  %1089 = vmatpush3.bf16.msra.mxu1 %v1171_v5 }
  0x7d   : > { %980 = vmatprep.subr.bf16.mxu0 %v1172_v6  ;;  %1082 = vmatprep.subr.bf16.mxu1 %v1172_v6 }
  0x80   : > { %981 = vmatpush3.bf16.msra.mxu0 %v1172_v6  ;;  %1090 = vmatpush3.bf16.msra.mxu1 %v1172_v6 }
  0x81   : > { %982 = vmatprep.subr.bf16.mxu0 %v1173_v8  ;;  %1083 = vmatprep.subr.bf16.mxu1 %v1173_v8 }
  0x84   : > { %983 = vmatpush3.bf16.msra.mxu0 %v1173_v8  ;;  %1091 = vmatpush3.bf16.msra.mxu1 %v1173_v8 }
  0x85   : > { %984 = vmatprep.subr.bf16.mxu0 %v1174_v9  ;;  %1084 = vmatprep.subr.bf16.mxu1 %v1174_v9 }
  0x88   : > { %985 = vmatpush3.bf16.msra.mxu0 %v1174_v9  ;;  %1092 = vmatpush3.bf16.msra.mxu1 %v1174_v9 }
  0x89   : > { %1053 = vmatprep.subr.bf16.mxu1 %v1356_v27 }
  0x8b   : > { %987 = vmatmul.mubr.bf16.vlgmr.msra.gmra.mrb[0].mxu0 %v1176_v10  ;;  %1003 = vmatmul.mubr.bf16.vlgmr.msra.gmra.mrb[0].mxu1 %v1184_v11 }
  0x8c   : > { %990 = vmatprep.mubr.bf16.mxu0 %v1177_v12  ;;  %1006 = vmatprep.mubr.bf16.mxu1 %v1185_v13 }
  0x8d   : > { %1055 = vmatpush3.bf16.msra.mxu1 %v1054_v26 }
  0x8e   : > { %1056 = vmatprep.subr.bf16.mxu1 %v1356_v27 }
  0x91   : > { %1058 = vmatpush3.bf16.msra.mxu1 %v1057_v30 }
  0x92   : > { %1059 = vmatprep.subr.bf16.mxu1 %v1356_v27 }
  0x93   : > { %991 = vmatmul.mubr.bf16.gmra.mrb[4].mxu0 %v1178_v14  ;;  %1007 = vmatmul.mubr.bf16.gmra.mrb[4].mxu1 %v1186_v15 }
  0x94   : > { %994 = vmatprep.mubr.bf16.mxu0 %v1179_v16  ;;  %1010 = vmatprep.mubr.bf16.mxu1 %v1187_v17 }
  0x95   : > { %1061 = vmatpush3.bf16.msra.mxu1 %v1060_v33 }
  0x96   : > { %1062 = vmatprep.subr.bf16.mxu1 %v1356_v27 }
  0x99   : > { %1064 = vmatpush3.bf16.msra.mxu1 %v1063_v36 }
  0x9a   : > { %1065 = vmatprep.subr.bf16.mxu1 %v1356_v27 }
  0x9b   : > { %995 = vmatmul.mubr.bf16.gmra.mrb[8].mxu0 %v1180_v18  ;;  %1011 = vmatmul.mubr.bf16.gmra.mrb[8].mxu1 %v1188_v19 }
  0x9c   : > { %998 = vmatprep.mubr.bf16.mxu0 %v1181_v20  ;;  %1014 = vmatprep.mubr.bf16.mxu1 %v1189_v21 }
  0x9d   : > { %1067 = vmatpush3.bf16.msra.mxu1 %v1066_v39 }
  0x9e   : > { %1068 = vmatprep.subr.bf16.mxu1 %v1356_v27 }
  0xa1   : > { %1070 = vmatpush3.bf16.msra.mxu1 %v1069_v42 }
  0xa2   : > { %1071 = vmatprep.subr.bf16.mxu1 %v1356_v27 }
  0xa3   : > { %999 = vmatmul.mubr.bf16.gmra.mrb[12].mxu0 %v1182_v22  ;;  %1015 = vmatmul.mubr.bf16.gmra.mrb[12].mxu1 %v1190_v23 }
  0xa4   : > { %1050 = vmatprep.mubr.msk.f32.mxu1 %vm1357_vm0, %v1358_v49 }
  0xa5   : > { %1073 = vmatpush3.bf16.msra.mxu1 %v1072_v45 }
  0xa6   : > { %1074 = vmatprep.subr.bf16.mxu1 %v1356_v27 }
  0xa9   : > { %1076 = vmatpush3.bf16.msra.mxu1 %v1075_v48 }
 0x15e   : > { %v988_v51 = vpop.f32.mrb[0].mxu0  ;;  %v1603_v52 = vpop.f32.mrb[0].mxu1 }
 0x15f   : > { %v506_v53 = vpop.f32.mrb[1].mxu0  ;;  %v1605_v54 = vpop.f32.mrb[1].mxu1  ;;  %v515_v60 = vadd.f32 %v988_v51, %v1601_v50 }
 0x160   : > { %v507_v55 = vadd.f32 %v1601_v50, %v506_v53  ;;  %v989_v56 = vpop.f32.mrb[2].mxu0  ;;  %v1608_v57 = vpop.f32.mrb[2].mxu1 }
 0x161   : > { %v509_v58 = vpop.f32.mrb[3].mxu0  ;;  %v1610_v59 = vpop.f32.mrb[3].mxu1  ;;  %v518_v63 = vadd.f32 %v989_v56, %v1601_v50  ;;  %v635_v1 = vmax.f32 %v515_v60, 0.0 }
 0x162   : > { %v510_v61 = vadd.f32 %v1601_v50, %v509_v58  ;;  %v633_v62 = vmax.f32 %v507_v55, 0.0 }
 0x163   : > { %v636_v7 = vmax.f32 %v518_v63, 0.0 }
 0x164   : > { %v634_v0 = vmax.f32 %v510_v61, 0.0 }
 0x166   : > { %v665_v2 = vadd.f32 %v634_v0, %v633_v62  ;;  %v992_v3 = vpop.f32.mrb[4].mxu0  ;;  %v1615_v4 = vpop.f32.mrb[4].mxu1 }
 0x167   : > { %v522_v5 = vpop.f32.mrb[5].mxu0  ;;  %v1617_v6 = vpop.f32.mrb[5].mxu1  ;;  %v531_v14 = vadd.f32 %v992_v3, %v1601_v50 }
 0x168   : > { %v666_v8 = vadd.f32 %v665_v2, %v635_v1  ;;  %v523_v9 = vadd.f32 %v1601_v50, %v522_v5  ;;  %v993_v10 = vpop.f32.mrb[6].mxu0  ;;  %v1620_v11 = vpop.f32.mrb[6].mxu1  ;;  %v571_v2 = vadd.f32 %v1601_v50, %v1605_v54  ;;  %v587_v54 = vadd.f32 %v1601_v50, %v1617_v6 }
 0x169   : > { %v525_v12 = vpop.f32.mrb[7].mxu0  ;;  %v1622_v13 = vpop.f32.mrb[7].mxu1  ;;  %v534_v19 = vadd.f32 %v993_v10, %v1601_v50  ;;  %v639_v21 = vmax.f32 %v531_v14, 0.0  ;;  %v574_v10 = vadd.f32 %v1601_v50, %v1610_v59 }
 0x16a   : > { %v637_v15 = vmax.f32 %v523_v9, 0.0  ;;  %v667_v16 = vadd.f32 %v666_v8, %v636_v7  ;;  %v526_v17 = vadd.f32 %v1601_v50, %v525_v12  ;;  %v649_v9 = vmax.f32 %v571_v2, 0.0 }
 0x16b   : > { %v640_v27 = vmax.f32 %v534_v19, 0.0  ;;  %v579_v12 = vadd.f32 %v1603_v52, %v1601_v50  ;;  %v590_v59 = vadd.f32 %v1601_v50, %v1622_v13  ;;  %v595_v52 = vadd.f32 %v1615_v4, %v1601_v50 }
 0x16c   : > { %v668_v18 = vadd.f32 %v667_v16, %v637_v15  ;;  %v638_v20 = vmax.f32 %v526_v17, 0.0  ;;  %v582_v16 = vadd.f32 %v1608_v57, %v1601_v50  ;;  %v650_v17 = vmax.f32 %v574_v10, 0.0 }
 0x16d   : > { %v598_v57 = vadd.f32 %v1620_v11, %v1601_v50  ;;  %v655_v6 = vmax.f32 %v595_v52, 0.0 }
 0x16e   : > { %v669_v22 = vadd.f32 %v668_v18, %v638_v20  ;;  %v996_v23 = vpop.f32.mrb[8].mxu0  ;;  %v1627_v24 = vpop.f32.mrb[8].mxu1  ;;  %v651_v18 = vmax.f32 %v579_v12, 0.0  ;;  %v652_v20 = vmax.f32 %v582_v16, 0.0 }
 0x16f   : > { %v538_v25 = vpop.f32.mrb[9].mxu0  ;;  %v602_v26 = vpop.f32.mrb[9].mxu1  ;;  %v547_v34 = vadd.f32 %v996_v23, %v1601_v50  ;;  %v611_v13 = vadd.f32 %v1627_v24, %v1601_v50 }
 0x170   : > { %v670_v28 = vadd.f32 %v669_v22, %v639_v21  ;;  %v539_v29 = vadd.f32 %v1601_v50, %v538_v25  ;;  %v997_v30 = vpop.f32.mrb[10].mxu0  ;;  %v1630_v31 = vpop.f32.mrb[10].mxu1  ;;  %v653_v22 = vmax.f32 %v587_v54, 0.0 }
 0x171   : > { %v541_v32 = vpop.f32.mrb[11].mxu0  ;;  %v605_v33 = vpop.f32.mrb[11].mxu1  ;;  %v550_v39 = vadd.f32 %v997_v30, %v1601_v50  ;;  %v643_v41 = vmax.f32 %v547_v34, 0.0  ;;  %v656_v30 = vmax.f32 %v598_v57, 0.0 }
 0x172   : > { %v641_v35 = vmax.f32 %v539_v29, 0.0  ;;  %v671_v36 = vadd.f32 %v670_v28, %v640_v27  ;;  %v542_v37 = vadd.f32 %v1601_v50, %v541_v32  ;;  %v654_v27 = vmax.f32 %v590_v59, 0.0 }
 0x173   : > { %v644_v47 = vmax.f32 %v550_v39, 0.0  ;;  %v603_v28 = vadd.f32 %v1601_v50, %v602_v26  ;;  %v659_v39 = vmax.f32 %v611_v13, 0.0 }
 0x174   : > { %v672_v38 = vadd.f32 %v671_v36, %v641_v35  ;;  %v642_v40 = vmax.f32 %v542_v37, 0.0  ;;  %v606_v35 = vadd.f32 %v1601_v50, %v605_v33  ;;  %v614_v37 = vadd.f32 %v1630_v31, %v1601_v50 }
 0x175   : > { %v657_v34 = vmax.f32 %v603_v28, 0.0 }
 0x176   : > { %v673_v42 = vadd.f32 %v672_v38, %v642_v40  ;;  %v1000_v43 = vpop.f32.mrb[12].mxu0  ;;  %v1016_v44 = vpop.f32.mrb[12].mxu1  ;;  %v658_v38 = vmax.f32 %v606_v35, 0.0  ;;  %v660_v40 = vmax.f32 %v614_v37, 0.0 }
 0x177   : > { %v554_v45 = vpop.f32.mrb[13].mxu0  ;;  %v618_v46 = vpop.f32.mrb[13].mxu1  ;;  %v563_v58 = vadd.f32 %v1000_v43, %v1601_v50  ;;  %v627_v33 = vadd.f32 %v1016_v44, %v1601_v50 }
 0x178   : > { %v674_v48 = vadd.f32 %v673_v42, %v643_v41  ;;  %v555_v49 = vadd.f32 %v1601_v50, %v554_v45  ;;  %v1001_v51 = vpop.f32.mrb[14].mxu0  ;;  %v1017_v53 = vpop.f32.mrb[14].mxu1  ;;  %v619_v11 = vadd.f32 %v1601_v50, %v618_v46 }
 0x179   : > { %v557_v55 = vpop.f32.mrb[15].mxu0  ;;  %v621_v56 = vpop.f32.mrb[15].mxu1  ;;  %v566_v0 = vadd.f32 %v1001_v51, %v1601_v50  ;;  %v647_v3 = vmax.f32 %v563_v58, 0.0  ;;  %v630_v24 = vadd.f32 %v1017_v53, %v1601_v50  ;;  %v663_v31 = vmax.f32 %v627_v33, 0.0 }
 0x17a   : > { %v645_v60 = vmax.f32 %v555_v49, 0.0  ;;  %v675_v61 = vadd.f32 %v674_v48, %v644_v47  ;;  %v558_v62 = vadd.f32 %v1601_v50, %v557_v55  ;;  %v661_v42 = vmax.f32 %v619_v11, 0.0 }
 0x17b   : > { %v648_v7 = vmax.f32 %v566_v0, 0.0  ;;  %v622_v43 = vadd.f32 %v1601_v50, %v621_v56  ;;  %v664_v51 = vmax.f32 %v630_v24, 0.0  ;;  %v718_v50 = vld [vmem:[%s1721_s4] sm:$0x1] }
 0x17c   : > { %v676_v63 = vadd.f32 %v675_v61, %v645_v60  ;;  %v646_v1 = vmax.f32 %v558_v62, 0.0 }
 0x17d   : > { %v662_v48 = vmax.f32 %v622_v43, 0.0 }
 0x17e   : > { %v677_v5 = vadd.f32 %v676_v63, %v646_v1 }
 0x180   : > { %v678_v8 = vadd.f32 %v677_v5, %v647_v3 }
 0x182   : > { %v679_v14 = vadd.f32 %v678_v8, %v648_v7 }
 0x184   : > { %v680_v15 = vadd.f32 %v679_v14, %v649_v9 }
 0x186   : > { %v681_v19 = vadd.f32 %v680_v15, %v650_v17 }
 0x188   : > { %v682_v21 = vadd.f32 %v681_v19, %v651_v18 }
 0x18a   : > { %v683_v23 = vadd.f32 %v682_v21, %v652_v20 }
 0x18c   : > { %v684_v25 = vadd.f32 %v683_v23, %v653_v22 }
 0x18e   : > { %v685_v29 = vadd.f32 %v684_v25, %v654_v27 }
 0x190   : > { %v686_v32 = vadd.f32 %v685_v29, %v655_v6 }
 0x192   : > { %v687_v36 = vadd.f32 %v686_v32, %v656_v30 }
 0x194   : > { %v688_v4 = vadd.f32 %v687_v36, %v657_v34 }
 0x196   : > { %v689_v26 = vadd.f32 %v688_v4, %v658_v38 }
 0x198   : > { %v690_v41 = vadd.f32 %v689_v26, %v659_v39 }
 0x19a   : > { %v691_v45 = vadd.f32 %v690_v41, %v660_v40 }
 0x19c   : > { %v692_v47 = vadd.f32 %v691_v45, %v661_v42 }
 0x19e   : > { %v693_v49 = vadd.f32 %v692_v47, %v662_v48 }
 0x1a0   : > { %v694_v46 = vadd.f32 %v693_v49, %v663_v31 }
 0x1a2   : > { %v695_v55 = vadd.f32 %v694_v46, %v664_v51 }
 0x1a4   : > { %v696_v58 = vrot.slane %v695_v55, 4 }
 0x1a6   : > { %v697_v60 = vadd.f32 %v696_v58, %v695_v55 }
 0x1a8   : > { %v698_v61 = vrot.slane %v697_v60, 2 }
 0x1aa   : > { %v699_v62 = vadd.f32 %v698_v61, %v697_v60 }
 0x1ac   : > { %v700_v56 = vrot.slane %v699_v62, 1 }
 0x1ae   : > { %v701_v44 = vadd.f32 %v700_v56, %v699_v62 }
 0x1b0   : > { %1051 = vmatmul.mubr.f32.vlgmr.msra.gmra.mrb[16].mxu1 %v701_v44 }
 0x283   : > { %v785_v53 = vpop.f32.mrb[16].mxu1 }
 0x284   : > { %v786_v63 = vadd.f32 %v785_v53, %v718_v50  ;;  %v1052_v0 = vpop.f32.mrb[17].mxu1 }
 0x286   : > { %789 = vst [vmem:[%s270_s13] sm:$0x1] %v786_v63 }
 0x287   : > { %1290 = shalt.err (!%p1287_p1)
}
 0x288   : > { %s1291_s27 = scalar_lea.hbm %s1673_s12, 16  ;;  %s1295_s26 = scalar_lea.hbm %s1722_s5, 32 }
 0x289   : > { %p1292_p13 = scmp.ne.s32.totalorder %s1673_s12, %s1291_s27  ;;  %p1296_p4 = scmp.lt.u32.totalorder %s1673_s12, %s1722_s5 }
 0x28a   : > { %p1297_p7 = scmp.lt.u32.totalorder %s1295_s26, %s1291_s27  ;;  %p1299_p11 = scmp.lt.u32.totalorder %s1291_s27, %s1673_s12 }
 0x28b   : > { %p1293_p6 = pnand %p1292_p13, %p1736_p0 }
 0x28c   : > { %p1298_p8 = por %p1297_p7, %p1296_p4 }
 0x28d   : > { %p1294_p10 = pneg %p1293_p6 }
 0x28e   : > { %p1300_p2 = por %p1299_p11, %p1298_p8 }
 0x290   : > { %p1301_p3 = pnand %p1300_p2, %p1294_p10 }
 0x292   : > { %1304 = shalt.err (!%p1301_p3)
}
 0x293   : > { %1103 = dma.vmem_to_hbm [thread:$0]  (%p1736_p0), %s1675_s14, 16, %s1673_s12, %s791_s30  }
 0x294 PF: > { %s815_s28 = sand.u32 1, %s1335_s18   ;;  %p1737_p5 = scmp.ne.s32.totalorder %s1727_s25, 0 }
 0x295   : > { %p1738_p9 = scmp.ge.s32.totalorder %s1347_s21, 2  ;;  %s816_s13 = scalar_lea.sflag [#allocation4], %s815_s28 }
 0x297   : > { %p1117_p12 = pnand %p1738_p9, %p1737_p5 }
 0x299   : > { %1330 = dma.done.wait (!%p1117_p12), %s816_s13, 16  }
 0x29a   : > { %1332 = vsyncadd (!%p1117_p12), %s816_s13, 4294967280  ;;  %p19_p1 = scmp.ge.s32.totalorder %s1503_s23, 4   ;;  %s1739_s18 = smov %s1339_s19 }
 0x29b   : > { %s1740_s19 = smov %s1343_s20  ;;  %s1741_s20 = smov %s1512_s7 }
 0x29c   : > { %s1742_s21 = smov %s1503_s23  ;;  %21 = sbr.rel (!%p19_p1) target bundleno = 6 (0x6), region = 93 }
 0x2a3   :  { %820 = vsyncpa [#allocation3], 1 }
 0x2a4   :  { %822 = vsyncpa [#allocation3 + $0x1], 1 }
 0x2a5   :  { %823 = vsyncpa [#allocation6], 1 }
 0x2a6   :  { %824 = vsyncpa [#allocation4], 1 }
 0x2a7   :  { %826 = vsyncpa [#allocation4 + $0x1], 1 }

</bundles_post_ra>
